<compile_context>
chip_gen: v5e
topology: v5e:2x2
jax: 0.10.0
libtpu: 0.0.40
codegen_flags: <defaults>
</compile_context>

<pallas_src>
import functools

import jax
import jax.numpy as jnp
from jax.experimental import pallas as pl
from jax.experimental.pallas import tpu as pltpu

EPS = 0.003
HIDDEN = (256, 128, 64)


def _round_up(x, m):
    return ((x + m - 1) // m) * m


def _choose_tile_m(n, block_m):
    """Pick the batch tile size.

    - Tiny batches: one tile covering the whole batch (block dims equal full
      array dims, so the (8,128) rule is satisfied).
    - Otherwise: an even number of balanced tiles (tm multiple of 8, <= block_m)
      so v7x's two TensorCores get equal work under the "parallel" grid axis.
      On single-TC v5e/v6e the extra step is just ~0.35 us of pipeline overhead.
    """
    if n <= 8:
        return max(n, 1)
    num_tiles = max(2, pl.cdiv(n, block_m))
    if num_tiles % 2:
        num_tiles += 1
    return _round_up(pl.cdiv(n, num_tiles), 8)


def _vmem_limit_bytes(tm, state_dim, action_dim, weight_bytes):
    # Double-buffered state/output tiles + f32/bf16 intermediates + weights,
    # with 2x headroom for register allocation / compiler temporaries.
    io = 2 * tm * (state_dim + action_dim) * 4
    inter = tm * (HIDDEN[0] * 6 + HIDDEN[1] * 6 + HIDDEN[2] * 6 + action_dim * 4)
    est = 2 * (io + inter + weight_bytes)
    # Stay under v7x's 64 MiB physical VMEM while still raising v5e's 16 MiB
    # default when useful.
    return int(min(max(est, 32 << 20), 48 << 20))


def _actor_kernel(action_lim,
                  s_ref,
                  w1_ref, b1_ref,
                  w2_ref, b2_ref,
                  w3_ref, b3_ref,
                  w4_ref, b4_ref,
                  out_ref):
    # Layer 1 in f32 (K=16, negligible cost) for better parity with the f32
    # reference; layers 2-4 feed the MXU in bf16, accumulate in f32.
    x = s_ref[...]

    h1 = jnp.dot(x, w1_ref[...], preferred_element_type=jnp.float32) + b1_ref[...]
    h1 = jnp.maximum(h1, 0.0).astype(jnp.bfloat16)

    h2 = jnp.dot(h1, w2_ref[...], preferred_element_type=jnp.float32) + b2_ref[...]
    h2 = jnp.maximum(h2, 0.0).astype(jnp.bfloat16)

    h3 = jnp.dot(h2, w3_ref[...], preferred_element_type=jnp.float32) + b3_ref[...]
    h3 = jnp.maximum(h3, 0.0).astype(jnp.bfloat16)

    logits = jnp.dot(h3, w4_ref[...], preferred_element_type=jnp.float32) + b4_ref[...]
    out_ref[...] = jnp.tanh(logits) * jnp.float32(action_lim)


def prepare_actor_params(params):
    """One-time prep: cast layers 2-4 weights to bf16 (hoisted out of forward).

    W1 stays f32 (first layer runs in f32); biases stay f32 (added after the
    f32 accumulation).
    """
    w1, b1, w2, b2, w3, b3, w4, b4 = params
    return (w1.astype(jnp.float32), b1.astype(jnp.float32),
            w2.astype(jnp.bfloat16), b2.astype(jnp.float32),
            w3.astype(jnp.bfloat16), b3.astype(jnp.float32),
            w4.astype(jnp.bfloat16), b4.astype(jnp.float32))


def actor_forward(state, prepared_params, action_lim, *, block_m=1024):
    """state: (n, state_dim) float32 -> action: (n, action_dim) float32.

    `prepared_params` must come from prepare_actor_params() (cast done once,
    outside the hot path).
    """
    w1, b1, w2, b2, w3, b3, w4, b4 = prepared_params
    n, state_dim = state.shape
    action_dim = w4.shape[1]

    tm = _choose_tile_m(n, block_m)
    grid = (pl.cdiv(n, tm),)

    row_map = lambda i: (i, 0)     # state / output tiles march over the batch
    const_map = lambda i: (0, 0)   # weights & biases pinned in VMEM (no re-DMA)

    weight_arrays = (w1, b1, w2, b2, w3, b3, w4, b4)
    weight_specs = [pl.BlockSpec(w.shape, const_map) for w in weight_arrays]
    weight_bytes = sum(int(w.size) * w.dtype.itemsize for w in weight_arrays)

    flops = 2 * n * (state_dim * HIDDEN[0]
                     + HIDDEN[0] * HIDDEN[1]
                     + HIDDEN[1] * HIDDEN[2]
                     + HIDDEN[2] * action_dim)
    bytes_accessed = weight_bytes + n * (state_dim + action_dim) * 4
    cost = pl.CostEstimate(flops=flops,
                           transcendentals=n * action_dim,
                           bytes_accessed=bytes_accessed)

    kernel = functools.partial(_actor_kernel, float(action_lim))

    return pl.pallas_call(
        kernel,
        out_shape=jax.ShapeDtypeStruct((n, action_dim), jnp.float32),
        grid=grid,
        in_specs=[pl.BlockSpec((tm, state_dim), row_map)] + weight_specs,
        out_specs=pl.BlockSpec((tm, action_dim), row_map),
        compiler_params=pltpu.CompilerParams(
            dimension_semantics=("parallel",),
            vmem_limit_bytes=_vmem_limit_bytes(tm, state_dim, action_dim,
                                               weight_bytes)),
        cost_estimate=cost,
    )(state, *weight_arrays)


def actor_reference(state, params, action_lim):
    """Pure-JAX f32 reference of the PyTorch forward."""
    w1, b1, w2, b2, w3, b3, w4, b4 = params
    h = jnp.maximum(state @ w1 + b1, 0.0)
    h = jnp.maximum(h @ w2 + b2, 0.0)
    h = jnp.maximum(h @ w3 + b3, 0.0)
    return jnp.tanh(h @ w4 + b4) * action_lim


def init_actor_params(key, state_dim, action_dim):
    """Init mirroring the PyTorch module.

    PyTorch: fanin_init uses fanin = weight.size()[0] == out_features,
    i.e. bound = 1/sqrt(out_features) for fc1..fc3; fc4 weight uses U(-EPS, EPS).
    Biases keep nn.Linear's default U(-1/sqrt(in_features), 1/sqrt(in_features)).
    Weights are stored transposed here: (in_features, out_features).
    """
    dims = [state_dim, *HIDDEN, action_dim]
    keys = jax.random.split(key, 8)
    params = []
    for i in range(4):
        fan_in, fan_out = dims[i], dims[i + 1]
        if i < 3:
            w_bound = 1.0 / jnp.sqrt(jnp.float32(fan_out))  # fanin_init quirk
        else:
            w_bound = EPS
        b_bound = 1.0 / jnp.sqrt(jnp.float32(fan_in))
        w = jax.random.uniform(keys[2 * i], (fan_in, fan_out),
                               minval=-w_bound, maxval=w_bound, dtype=jnp.float32)
        b = jax.random.uniform(keys[2 * i + 1], (1, fan_out),
                               minval=-b_bound, maxval=b_bound, dtype=jnp.float32)
        params.extend([w, b])
    return tuple(params)


if __name__ == "__main__":
    state_dim = 16
    action_dim = 4
    action_lim = 2.0

    key = jax.random.PRNGKey(0)
    k_params, k_small, k_big = jax.random.split(key, 3)
    params = init_actor_params(k_params, state_dim, action_dim)
    prepared = prepare_actor_params(params)   # one-time bf16 cast, off hot path

    # Small batch (single grid step, block dims equal the full array dims).
    state_small = jax.random.normal(k_small, (2, state_dim), dtype=jnp.float32)
    act_small = jax.block_until_ready(actor_forward(state_small, prepared, action_lim))
    assert act_small.shape == (2, action_dim)
    assert act_small.dtype == jnp.float32
    assert bool(jnp.all(jnp.abs(act_small) <= action_lim))
    ref_small = actor_reference(state_small, params, action_lim)
    assert bool(jnp.allclose(act_small, ref_small, atol=1e-2)), "small-batch mismatch"

    # Larger batch exercising the balanced 2-tile grid (last tile partial/masked).
    state_big = jax.random.normal(k_big, (300, state_dim), dtype=jnp.float32)
    act_big = jax.block_until_ready(actor_forward(state_big, prepared, action_lim))
    assert act_big.shape == (300, action_dim)
    ref_big = actor_reference(state_big, params, action_lim)
    assert bool(jnp.allclose(act_big, ref_big, atol=1e-2)), "gridded-batch mismatch"

    print("KERNEL_OK")
</pallas_src>

<mosaic_0001>
module attributes {stable_mosaic.version = 11 : i64} {
  func.func @_actor_kernel(%arg0: i32, %arg1: memref<2x16xf32, #tpu.memory_space<vmem>>, %arg2: memref<16x256xf32, #tpu.memory_space<vmem>>, %arg3: memref<1x256xf32, #tpu.memory_space<vmem>>, %arg4: memref<256x128xbf16, #tpu.memory_space<vmem>>, %arg5: memref<1x128xf32, #tpu.memory_space<vmem>>, %arg6: memref<128x64xbf16, #tpu.memory_space<vmem>>, %arg7: memref<1x64xf32, #tpu.memory_space<vmem>>, %arg8: memref<64x4xbf16, #tpu.memory_space<vmem>>, %arg9: memref<1x4xf32, #tpu.memory_space<vmem>>, %arg10: memref<2x4xf32, #tpu.memory_space<vmem>>) attributes {dimension_semantics = [#tpu.dimension_semantics<parallel>], iteration_bounds = array<i64: 1>, scalar_prefetch = 0 : i64, scratch_operands = 0 : i64, tpu.core_type = #tpu.core_type<tc>, window_params = [{transform_indices = @transform_0, window_bounds = array<i64: 2, 16>}, {pipeline_mode = #tpu.pipeline_mode<synchronous>, transform_indices = @transform_1, window_bounds = array<i64: 16, 256>}, {pipeline_mode = #tpu.pipeline_mode<synchronous>, transform_indices = @transform_2, window_bounds = array<i64: 1, 256>}, {pipeline_mode = #tpu.pipeline_mode<synchronous>, transform_indices = @transform_3, window_bounds = array<i64: 256, 128>}, {pipeline_mode = #tpu.pipeline_mode<synchronous>, transform_indices = @transform_4, window_bounds = array<i64: 1, 128>}, {pipeline_mode = #tpu.pipeline_mode<synchronous>, transform_indices = @transform_5, window_bounds = array<i64: 128, 64>}, {pipeline_mode = #tpu.pipeline_mode<synchronous>, transform_indices = @transform_6, window_bounds = array<i64: 1, 64>}, {pipeline_mode = #tpu.pipeline_mode<synchronous>, transform_indices = @transform_7, window_bounds = array<i64: 64, 4>}, {pipeline_mode = #tpu.pipeline_mode<synchronous>, transform_indices = @transform_8, window_bounds = array<i64: 1, 4>}, {transform_indices = @transform_9, window_bounds = array<i64: 2, 4>}]} {
    %c0 = arith.constant 0 : index
    %c0_0 = arith.constant 0 : index
    %0 = vector.load %arg1[%c0, %c0_0] : memref<2x16xf32, #tpu.memory_space<vmem>>, vector<2x16xf32>
    %c0_1 = arith.constant 0 : index
    %c0_2 = arith.constant 0 : index
    %1 = vector.load %arg2[%c0_1, %c0_2] : memref<16x256xf32, #tpu.memory_space<vmem>>, vector<16x256xf32>
    %cst = arith.constant dense<0.000000e+00> : vector<2x256xf32>
    %2 = tpu.matmul %0, %1, %cst {dimension_numbers = #tpu.dot_dimension_numbers<[1], [0], [0], [1], [0, 0, 1, 1], [], []>} : vector<2x16xf32>, vector<16x256xf32>, vector<2x256xf32> -> vector<2x256xf32>
    %c0_3 = arith.constant 0 : index
    %c0_4 = arith.constant 0 : index
    %3 = vector.load %arg3[%c0_3, %c0_4] : memref<1x256xf32, #tpu.memory_space<vmem>>, vector<1x256xf32>
    %4 = vector.broadcast %3 : vector<1x256xf32> to vector<2x256xf32>
    %5 = arith.addf %2, %4 : vector<2x256xf32>
    %cst_5 = arith.constant 0.000000e+00 : f32
    %6 = vector.broadcast %cst_5 : f32 to vector<2x256xf32>
    %7 = arith.maximumf %5, %6 : vector<2x256xf32>
    %8 = arith.truncf %7 : vector<2x256xf32> to vector<2x256xbf16>
    %c0_6 = arith.constant 0 : index
    %c0_7 = arith.constant 0 : index
    %9 = vector.load %arg4[%c0_6, %c0_7] : memref<256x128xbf16, #tpu.memory_space<vmem>>, vector<256x128xbf16>
    %cst_8 = arith.constant dense<0.000000e+00> : vector<2x128xf32>
    %10 = tpu.matmul %8, %9, %cst_8 {dimension_numbers = #tpu.dot_dimension_numbers<[1], [0], [0], [1], [0, 0, 1, 1], [], []>} : vector<2x256xbf16>, vector<256x128xbf16>, vector<2x128xf32> -> vector<2x128xf32>
    %c0_9 = arith.constant 0 : index
    %c0_10 = arith.constant 0 : index
    %11 = vector.load %arg5[%c0_9, %c0_10] : memref<1x128xf32, #tpu.memory_space<vmem>>, vector<1x128xf32>
    %12 = vector.broadcast %11 : vector<1x128xf32> to vector<2x128xf32>
    %13 = arith.addf %10, %12 : vector<2x128xf32>
    %cst_11 = arith.constant 0.000000e+00 : f32
    %14 = vector.broadcast %cst_11 : f32 to vector<2x128xf32>
    %15 = arith.maximumf %13, %14 : vector<2x128xf32>
    %16 = arith.truncf %15 : vector<2x128xf32> to vector<2x128xbf16>
    %c0_12 = arith.constant 0 : index
    %c0_13 = arith.constant 0 : index
    %17 = vector.load %arg6[%c0_12, %c0_13] : memref<128x64xbf16, #tpu.memory_space<vmem>>, vector<128x64xbf16>
    %cst_14 = arith.constant dense<0.000000e+00> : vector<2x64xf32>
    %18 = tpu.matmul %16, %17, %cst_14 {dimension_numbers = #tpu.dot_dimension_numbers<[1], [0], [0], [1], [0, 0, 1, 1], [], []>} : vector<2x128xbf16>, vector<128x64xbf16>, vector<2x64xf32> -> vector<2x64xf32>
    %c0_15 = arith.constant 0 : index
    %c0_16 = arith.constant 0 : index
    %19 = vector.load %arg7[%c0_15, %c0_16] : memref<1x64xf32, #tpu.memory_space<vmem>>, vector<1x64xf32>
    %20 = vector.broadcast %19 : vector<1x64xf32> to vector<2x64xf32>
    %21 = arith.addf %18, %20 : vector<2x64xf32>
    %cst_17 = arith.constant 0.000000e+00 : f32
    %22 = vector.broadcast %cst_17 : f32 to vector<2x64xf32>
    %23 = arith.maximumf %21, %22 : vector<2x64xf32>
    %24 = arith.truncf %23 : vector<2x64xf32> to vector<2x64xbf16>
    %c0_18 = arith.constant 0 : index
    %c0_19 = arith.constant 0 : index
    %25 = vector.load %arg8[%c0_18, %c0_19] : memref<64x4xbf16, #tpu.memory_space<vmem>>, vector<64x4xbf16>
    %cst_20 = arith.constant dense<0.000000e+00> : vector<2x4xf32>
    %26 = tpu.matmul %24, %25, %cst_20 {dimension_numbers = #tpu.dot_dimension_numbers<[1], [0], [0], [1], [0, 0, 1, 1], [], []>} : vector<2x64xbf16>, vector<64x4xbf16>, vector<2x4xf32> -> vector<2x4xf32>
    %c0_21 = arith.constant 0 : index
    %c0_22 = arith.constant 0 : index
    %27 = vector.load %arg9[%c0_21, %c0_22] : memref<1x4xf32, #tpu.memory_space<vmem>>, vector<1x4xf32>
    %28 = vector.broadcast %27 : vector<1x4xf32> to vector<2x4xf32>
    %29 = arith.addf %26, %28 : vector<2x4xf32>
    %30 = math.tanh %29 : vector<2x4xf32>
    %cst_23 = arith.constant 2.000000e+00 : f32
    %31 = vector.broadcast %cst_23 : f32 to vector<2x4xf32>
    %32 = arith.mulf %30, %31 : vector<2x4xf32>
    %c0_24 = arith.constant 0 : index
    %c0_25 = arith.constant 0 : index
    %33 = vector.load %arg10[%c0_24, %c0_25] : memref<2x4xf32, #tpu.memory_space<vmem>>, vector<2x4xf32>
    tpu.vector_store %arg10[%c0_24, %c0_25], %32 {strides = array<i32>} : memref<2x4xf32, #tpu.memory_space<vmem>>, vector<2x4xf32>,
    return
  }
  func.func @transform_0(%arg0: i32) -> (i32, i32) {
    %c0_i32 = arith.constant 0 : i32
    %c0_i32_0 = arith.constant 0 : i32
    return %arg0, %c0_i32 : i32, i32
  }
  func.func @transform_1(%arg0: i32) -> (i32, i32) {
    %c0_i32 = arith.constant 0 : i32
    %c0_i32_0 = arith.constant 0 : i32
    %c0_i32_1 = arith.constant 0 : i32
    return %c0_i32, %c0_i32_0 : i32, i32
  }
  func.func @transform_2(%arg0: i32) -> (i32, i32) {
    %c0_i32 = arith.constant 0 : i32
    %c0_i32_0 = arith.constant 0 : i32
    %c0_i32_1 = arith.constant 0 : i32
    return %c0_i32, %c0_i32_0 : i32, i32
  }
  func.func @transform_3(%arg0: i32) -> (i32, i32) {
    %c0_i32 = arith.constant 0 : i32
    %c0_i32_0 = arith.constant 0 : i32
    %c0_i32_1 = arith.constant 0 : i32
    return %c0_i32, %c0_i32_0 : i32, i32
  }
  func.func @transform_4(%arg0: i32) -> (i32, i32) {
    %c0_i32 = arith.constant 0 : i32
    %c0_i32_0 = arith.constant 0 : i32
    %c0_i32_1 = arith.constant 0 : i32
    return %c0_i32, %c0_i32_0 : i32, i32
  }
  func.func @transform_5(%arg0: i32) -> (i32, i32) {
    %c0_i32 = arith.constant 0 : i32
    %c0_i32_0 = arith.constant 0 : i32
    %c0_i32_1 = arith.constant 0 : i32
    return %c0_i32, %c0_i32_0 : i32, i32
  }
  func.func @transform_6(%arg0: i32) -> (i32, i32) {
    %c0_i32 = arith.constant 0 : i32
    %c0_i32_0 = arith.constant 0 : i32
    %c0_i32_1 = arith.constant 0 : i32
    return %c0_i32, %c0_i32_0 : i32, i32
  }
  func.func @transform_7(%arg0: i32) -> (i32, i32) {
    %c0_i32 = arith.constant 0 : i32
    %c0_i32_0 = arith.constant 0 : i32
    %c0_i32_1 = arith.constant 0 : i32
    return %c0_i32, %c0_i32_0 : i32, i32
  }
  func.func @transform_8(%arg0: i32) -> (i32, i32) {
    %c0_i32 = arith.constant 0 : i32
    %c0_i32_0 = arith.constant 0 : i32
    %c0_i32_1 = arith.constant 0 : i32
    return %c0_i32, %c0_i32_0 : i32, i32
  }
  func.func @transform_9(%arg0: i32) -> (i32, i32) {
    %c0_i32 = arith.constant 0 : i32
    %c0_i32_0 = arith.constant 0 : i32
    return %arg0, %c0_i32 : i32, i32
  }
}

</mosaic_0001>

<bundles_post_ra>
// kernel: tpu_custom_call.1
= control target key start
LH: loop header
LB: loop body
LE: loop exit
PB: predicated region body
PF: predicated region fallthrough
CT: control target
= control target key end

     0   :  { %14 = vsyncpa [#allocation3], 0  ;;  %s834_s0 = inlined_call_operand.vmem [shape: f32[2,16], index: 0, kind: input, shape index: {}]   ;;  %s835_s1 = inlined_call_operand.hbm [shape: f32[16,256], index: 1, kind: input, shape index: {}]   ;;  %s836_s2 = inlined_call_operand.hbm [shape: f32[1,256], index: 2, kind: input, shape index: {}]   ;;  %s837_s3 = inlined_call_operand.vmem [shape: bf16[256,128], index: 3, kind: input, shape index: {}]   ;;  %s838_s4 = inlined_call_operand.vmem [shape: f32[1,128], index: 4, kind: input, shape index: {}]   ;;  %s839_s5 = inlined_call_operand.vmem [shape: bf16[128,64], index: 5, kind: input, shape index: {}]   ;;  %s840_s6 = inlined_call_operand.vmem [shape: f32[1,64], index: 6, kind: input, shape index: {}]   ;;  %s841_s7 = inlined_call_operand.vmem [shape: bf16[64,4], index: 7, kind: input, shape index: {}]   ;;  %s842_s8 = inlined_call_operand.vmem [shape: f32[1,4], index: 8, kind: input, shape index: {}]   ;;  %s843_s9 = inlined_call_operand.hbm [shape: f32[2,4], index: 9, kind: output, shape index: {}]  }
   0x1   :  { %15 = vsyncpa [#allocation6], 0 }
   0x2   :  { %16 = vsyncpa [#allocation4], 0  ;;  %s23_s11 = sshll.u32 %s835_s1, 4  ;;  %s672_s12 = smov [#allocation2]   ;;  %s24_s11 = int_to_ptr.hbm [resolvable:$true] %s23_s11 }
   0x3   :  { %s25_s13 = sshll.u32 %s672_s12, 4  ;;  %s37_s16 = sshll.u32 %s836_s2, 4  ;;  %s26_s13 = int_to_ptr.vmem [resolvable:$true] %s25_s13  ;;  %s38_s16 = int_to_ptr.hbm [resolvable:$true] %s37_s16 }
   0x4   :  { %s673_s17 = smov 256   ;;  %s674_s18 = smov 16  }
   0x5   :  { %31 = dma.hbm_to_vmem [thread:$0]  %s24_s11, 512, %s26_s13, [#allocation3], %s673_s17, %s673_s17, %s674_s18  }
   0x6   :  { %s675_s19 = smov [#allocation5]  }
   0x7   :  { %s39_s20 = sshll.u32 %s675_s19, 4  ;;  %s40_s20 = int_to_ptr.vmem [resolvable:$true] %s39_s20 }
   0x8   :  { %42 = dma.hbm_to_vmem [thread:$0]  %s38_s16, 32, %s40_s20, [#allocation6]  }
   0x9   :  { %666 = dma.done.wait [#allocation3], 512  }
   0xa   :  { %667 = vsyncadd [#allocation3], 4294966784 }
   0xb   :  { %668 = dma.done.wait [#allocation6], 32  }
   0xc   :  { %669 = vsyncadd [#allocation6], 4294967264  ;;  %v67_v0 = vld [vmem:[#allocation2 + $0x10] sm:$0xff]  ;;  %v65_v1 = vld [vmem:[#allocation2] sm:$0xff]  ;;  %vm75_vm0 = vcmask 130048   ;;  %vm402_vm1 = vcmask 523264  }
   0xd   :  { %93 = vmatpush.msra.mxu1 %v67_v0  ;;  %v64_v2 = vld [vmem:[%s834_s0] sm:$0x3]  ;;  %v563_v3 = vld [vmem:[%s837_s3 + $0x38] sm:$0xff]  ;;  %v562_v6 = vld [vmem:[%s837_s3 + $0x30] sm:$0xff]  ;;  %vm421_vm2 = vcmask 25600  }
   0xe   :  { %v68_v4 = vld [vmem:[#allocation2 + $0x18] sm:$0xff]  ;;  %255 = vmatpush.bf16.msra.mxu2 %v563_v3  ;;  %v66_v7 = vld [vmem:[#allocation2 + $0x8] sm:$0xff]  ;;  %v570_v8 = vld [vmem:[%s837_s3 + $0x70] sm:$0xff] }
   0xf   :  { %v571_v5 = vld [vmem:[%s837_s3 + $0x78] sm:$0xff]  ;;  %94 = vmatpush.msra.mxu1 %v65_v1  ;;  %v561_v9 = vld [vmem:[%s837_s3 + $0x28] sm:$0xff]  ;;  %v560_v11 = vld [vmem:[%s837_s3 + $0x20] sm:$0xff] }
  0x10   :  { %441 = vmatmul.msk.f32.vlgmr.msra.gmra.mxu1 %vm75_vm0, %v64_v2  ;;  %268 = vmatpush.bf16.msra.mxu3 %v571_v5  ;;  %v569_v10 = vld [vmem:[%s837_s3 + $0x68] sm:$0xff]  ;;  %v568_v12 = vld [vmem:[%s837_s3 + $0x60] sm:$0xff]  ;;  %v559_v13 = vld [vmem:[%s837_s3 + $0x18] sm:$0xff] }
  0x11   :  { %113 = vmatpush.msrb.mxu1 %v68_v4  ;;  %v558_v14 = vld [vmem:[%s837_s3 + $0x10] sm:$0xff]  ;;  %v557_v15 = vld [vmem:[%s837_s3 + $0x8] sm:$0xff]  ;;  %v567_v16 = vld [vmem:[%s837_s3 + $0x58] sm:$0xff] }
  0x12   :  { %256 = vmatpush.bf16.msra.mxu2 %v562_v6  ;;  %v556_v17 = vld [vmem:[%s837_s3] sm:$0xff]  ;;  %v566_v18 = vld [vmem:[%s837_s3 + $0x50] sm:$0xff]  ;;  %v565_v19 = vld [vmem:[%s837_s3 + $0x48] sm:$0xff] }
  0x13   :  { %114 = vmatpush.msrb.mxu1 %v66_v7  ;;  %v564_v20 = vld [vmem:[%s837_s3 + $0x40] sm:$0xff]  ;;  %v579_v21 = vld [vmem:[%s839_s5 + $0x38] sm:$0xff]  ;;  %v578_v22 = vld [vmem:[%s839_s5 + $0x30] sm:$0xff] }
  0x14   :  { %269 = vmatpush.bf16.msra.mxu3 %v570_v8  ;;  %351 = vmatpush.bf16.msra.mxu0 %v579_v21  ;;  %v577_v23 = vld [vmem:[%s839_s5 + $0x28] sm:$0xff]  ;;  %v576_v24 = vld [vmem:[%s839_s5 + $0x20] sm:$0xff]  ;;  %v575_v36 = vld [vmem:[%s839_s5 + $0x18] sm:$0xff] }
  0x15   :  { %v69_v25 = vld [vmem:[#allocation5] sm:$0x3]  ;;  %v574_v37 = vld [vmem:[%s839_s5 + $0x10] sm:$0xff]  ;;  %v573_v38 = vld [vmem:[%s839_s5 + $0x8] sm:$0xff] }
  0x16   :  { %257 = vmatpush.bf16.msra.mxu2 %v561_v9  ;;  %v71_v26 = vperm.slane %v69_v25, 0  ;;  %v72_v31 = vperm.slane %v69_v25, 1  ;;  %v572_v39 = vld [vmem:[%s839_s5] sm:$0xff]  ;;  %v583_v40 = vld [vmem:[%s841_s7 + $0x18] sm:$0xff]  ;;  %v582_v41 = vld [vmem:[%s841_s7 + $0x10] sm:$0xff] }
  0x17   :  { %410 = vmatpush.bf16.msra.mxu1 %v583_v40  ;;  %v589_v43 = vld [vmem:[%s838_s4] ss:$0 sm:$0xff]  ;;  %v581_v51 = vld [vmem:[%s841_s7 + $0x8] sm:$0xff] }
  0x18   :  { %442 = vmatmul.msk.f32.vlgmr.msrb.gmra.mxu1 %vm75_vm0, %v64_v2  ;;  %270 = vmatpush.bf16.msra.mxu3 %v569_v10  ;;  %v580_v52 = vld [vmem:[%s841_s7] sm:$0xff]  ;;  %s676_s7 = smov [#allocation7]  }
  0x19   :  { %352 = vmatpush.bf16.msra.mxu0 %v578_v22  ;;  %v590_v53 = vld [vmem:[%s840_s6] ss:$0 sm:$0xff]  ;;  %s428_s10 = sshll.u32 %s676_s7, 4  ;;  %s430_s6 = sshll.u32 %s843_s9, 4  ;;  %s429_s10 = int_to_ptr.vmem [resolvable:$true] %s428_s10  ;;  %s431_s6 = int_to_ptr.hbm [resolvable:$true] %s430_s6 }
  0x1a   :  { %258 = vmatpush.bf16.msra.mxu2 %v560_v11  ;;  %v591_v59 = vld [vmem:[%s842_s8] ss:$0 sm:$0xff] }
  0x1b   :  { %411 = vmatpush.bf16.msra.mxu1 %v582_v41 }
  0x1c   :  { %271 = vmatpush.bf16.msra.mxu3 %v568_v12 }
  0x1d   :  { %353 = vmatpush.bf16.msra.mxu0 %v577_v23 }
  0x1e   :  { %259 = vmatpush.bf16.msra.mxu2 %v559_v13 }
  0x1f   :  { %412 = vmatpush.bf16.msra.mxu1 %v581_v51 }
  0x20   :  { %272 = vmatpush.bf16.msra.mxu3 %v567_v16 }
  0x21   :  { %354 = vmatpush.bf16.msra.mxu0 %v576_v24 }
  0x22   :  { %260 = vmatpush.bf16.msra.mxu2 %v558_v14 }
  0x23   :  { %413 = vmatpush.bf16.msra.mxu1 %v580_v52 }
  0x24   :  { %273 = vmatpush.bf16.msra.mxu3 %v566_v18 }
  0x25   :  { %355 = vmatpush.bf16.msra.mxu0 %v575_v36 }
  0x26   :  { %261 = vmatpush.bf16.msra.mxu2 %v557_v15 }
  0x28   :  { %274 = vmatpush.bf16.msra.mxu3 %v565_v19 }
  0x29   :  { %356 = vmatpush.bf16.msra.mxu0 %v574_v37 }
  0x2a   :  { %262 = vmatpush.bf16.msra.mxu2 %v556_v17 }
  0x2c   :  { %275 = vmatpush.bf16.msra.mxu3 %v564_v20 }
  0x2d   :  { %357 = vmatpush.bf16.msra.mxu0 %v573_v38 }
  0x31   :  { %358 = vmatpush.bf16.msra.mxu0 %v572_v39 }
  0x8d   :  { %v96_v27 = vpop.f32.mrf.mxu1 }
  0x8e   :  { %v97_v28 = vadd.f32 %v96_v27, %v71_v26 }
  0x90   :  { %v119_v29 = vmax.f32 %v97_v28, 0.0 }
  0x92   :  { %v121_v30 = vpack.c.bf16 %v119_v29, %v119_v29 }
  0x94   :  { %263 = vmatmul.bf16.vlgmr.msra.gmra.mxu2 %v121_v30 }
  0x95   :  { %v116_v32 = vpop.f32.mrf.mxu1 }
  0x96   :  { %v117_v33 = vadd.f32 %v116_v32, %v72_v31 }
  0x98   :  { %v120_v34 = vmax.f32 %v117_v33, 0.0 }
  0x9a   :  { %v122_v35 = vpack.c.bf16 %v120_v34, %v120_v34 }
  0x9c   :  { %276 = vmatmul.bf16.vlgmr.msra.gmra.mxu3 %v122_v35 }
 0x117   :  { %v264_v42 = vpop.f32.mrf.mxu2 }
 0x118   :  { %v265_v44 = vadd.f32 %v589_v43, %v264_v42 }
 0x11f   :  { %v266_v45 = vpop.f32.mrf.mxu2  ;;  %v277_v46 = vpop.f32.mrf.mxu3 }
 0x120   :  { %v278_v47 = vadd.f32 %v277_v46, %v265_v44 }
 0x122   :  { %v281_v48 = vmax.f32 %v278_v47, 0.0 }
 0x124   :  { %v282_v49 = vpack.c.bf16 %v281_v48, %v281_v48 }
 0x126   :  { %359 = vmatmul.bf16.vlgmr.msra.gmra.mxu0 %v282_v49 }
 0x127   :  { %v279_v50 = vpop.f32.mrf.mxu3 }
 0x1a3   :  { %v360_v54 = vpop.f32.mrf.mxu0 }
 0x1a4   :  { %v361_v55 = vadd.f32 %v590_v53, %v360_v54 }
 0x1a6   :  { %v364_v56 = vmax.f32 %v361_v55, 0.0 }
 0x1a8   :  { %v365_v57 = vpack.c.bf16 %v364_v56, %v364_v56 }
 0x1aa   :  { %555 = vmatmul.msk.bf16.vlgmr.msra.gmra.mxu1 %vm402_vm1, %v365_v57 }
 0x1ab   :  { %v362_v58 = vpop.f32.mrf.mxu0 }
 0x227   :  { %v415_v60 = vpop.f32.mrf.mxu1 }
 0x228   :  { %v416_v61 = vadd.f32 %v591_v59, %v415_v60 }
 0x22a   :  { %592 = vtanh.f32 %v416_v61 }
 0x22f   :  { %v417_v62 = vpop.f32.mrf.mxu1 }
 0x230   :  { %v593_v63 = vpop.eup %592 }
 0x231   :  { %v420_v0 = vmul.f32 2.0, %v593_v63 }
 0x233   :  { %422 = vst.msk [vmem:[#allocation7] sm:$0x3] %vm421_vm2, %v420_v0 }
 0x234   :  { %433 = dma.vmem_to_hbm [thread:$0]  %s429_s10, 32, %s431_s6, [#allocation4]  }
 0x235   :  { %670 = dma.done.wait [#allocation4], 32  }
 0x236   :  { %671 = vsyncadd [#allocation4], 4294967264 }
 0x237   :  { %438 = vsyncpa [#allocation3], 1 }
 0x238   :  { %439 = vsyncpa [#allocation6], 1 }
 0x239   :  { %440 = vsyncpa [#allocation4], 1 }

</bundles_post_ra>
